<compile_context>
chip_gen: v5e
topology: v5e:2x2
jax: 0.10.0
libtpu: 0.0.40
codegen_flags: <defaults>
</compile_context>

<pallas_src>
import math

import jax
import jax.numpy as jnp
from jax import lax
from jax.experimental import pallas as pl
from jax.experimental.pallas import tpu as pltpu


_MXU_ROW_ALIGN = 128            # full MXU row occupancy on all current chips
_MIN_ROW_TILE = 8               # sublane granularity
_SINGLE_BUFFER_WEIGHTS_OK = True  # flipped off once if pl.Buffered(1) is rejected


# ----------------------------- math helpers ---------------------------------

def _erf_gelu(x):
    # exact-erf gelu, matching the torch reference
    return x * 0.5 * (1.0 + lax.erf(x * (1.0 / math.sqrt(2.0))))


def _tf_layernorm(y, gamma, beta, eps=1e-12):
    # TF-style LayerNorm (epsilon inside the square root), f32 math
    u = jnp.mean(y, axis=-1, keepdims=True)
    s = jnp.mean(jnp.square(y - u), axis=-1, keepdims=True)
    return gamma * ((y - u) * lax.rsqrt(s + eps)) + beta


# ----------------------------- Pallas kernel ---------------------------------

def fused_layer_kernel(filt_ref, x_ref, g1_ref, be1_ref, w1_ref, b1_ref,
                       w2_ref, b2_ref, g2_ref, be2_ref, o_ref):
    """Fused: LN1(filt + x) -> FFN (gelu) -> LN2(ffn + LN1 out), for one row tile."""
    cd = w1_ref.dtype  # MXU compute dtype (bf16 production path, f32 for the check path)

    x = x_ref[...].astype(jnp.float32)
    f = filt_ref[...].astype(jnp.float32)

    # FilterLayer residual + LayerNorm (dropout is identity in eval mode)
    h = _tf_layernorm(f + x, g1_ref[...], be1_ref[...])

    # Intermediate.dense_1 -> gelu -> dense_2 (reduced-precision MXU inputs, f32 acc)
    a = jnp.dot(h.astype(cd), w1_ref[...], preferred_element_type=jnp.float32) + b1_ref[...]
    if cd == jnp.float32:
        a = _erf_gelu(a)
    else:
        # GELU in the MXU compute dtype: the second matmul consumes this dtype anyway and
        # bf16 elementwise packing halves the VALU cost of the (tm, 4H) tensor on v6e/v7x.
        # Still the exact-erf gelu (torch reference); tanh/EUP approximation not used.
        a = _erf_gelu(a.astype(cd))
    z = jnp.dot(a.astype(cd), w2_ref[...], preferred_element_type=jnp.float32) + b2_ref[...]

    # TODO(synk): training-mode dropout (pltpu.prng_random_bits mask) not emitted; eval-mode identity.
    o_ref[...] = _tf_layernorm(z + h, g2_ref[...], be2_ref[...]).astype(o_ref.dtype)


# ----------------------------- sizing helpers ---------------------------------

def _physical_vmem_bytes():
    """Per-TensorCore physical VMEM (64 MiB v7x, 128 MiB v5e/v6e); conservative fallback."""
    try:
        info = pltpu.get_tpu_info()
        v = getattr(info, "vmem_capacity_bytes", None)
        if v:
            return int(v)
    except Exception:
        pass
    return 64 * 1024 * 1024


def _choose_row_tile(n_rows, requested, *, align=_MXU_ROW_ALIGN, min_tiles=2):
    """MXU-row-aligned tile (multiple of 128) when N is large enough; for small N use
    multiples of 8 and try to produce >= min_tiles tiles so megacore parts shard the
    grid. The caller zero-pads N up to a multiple of the returned tile (no ragged tm)."""
    requested = max(_MIN_ROW_TILE, int(requested))
    if n_rows >= min_tiles * align:
        return max(align, (min(requested, n_rows // min_tiles) // align) * align)
    tm = max(_MIN_ROW_TILE, (min(requested, n_rows) // _MIN_ROW_TILE) * _MIN_ROW_TILE)
    while tm > _MIN_ROW_TILE and pl.cdiv(n_rows, tm) < min_tiles:
        tm -= _MIN_ROW_TILE
    return tm


def _vmem_need_bytes(tm, H, H4, w_bytes, single_buffer_weights):
    """Exact VMEM footprint estimate for one pallas_call (no blanket 2x hedging)."""
    wbuf = 1 if single_buffer_weights else 2
    return (wbuf * (H * H4 + H4 * H) * w_bytes        # W1, W2 resident
            + wbuf * (H4 + 5 * H) * 4                 # biases + LN gamma/beta (f32)
            + 3 * 2 * tm * H * 4                      # filt / x / out row tiles, double-buffered
            + tm * H4 * (4 + w_bytes)                 # gelu intermediate (f32 acc + cd copy)
            + 2 * tm * H * 4)                         # h and z live f32 values


# ----------------------------- fused layer call --------------------------------

def fused_layer_forward(filt, x, prep, *, tm=512):
    """filt, x: [N, H] float32 rows. Runs LN1 + FFN + LN2 fused in one Pallas call.
    `prep` is the output of prepare_layer_params (weights already in compute dtype)."""
    global _SINGLE_BUFFER_WEIGHTS_OK

    N, H = x.shape
    w1, w2 = prep["w1"], prep["w2"]
    H4 = w1.shape[1]
    w_bytes = jnp.dtype(w1.dtype).itemsize

    vmem_cap = int(_physical_vmem_bytes() * 0.8)  # headroom for compiler internal scratch

    tm = _choose_row_tile(N, tm)
    # Shrink MXU-aligned tiles (halving, staying 128-aligned) until the footprint fits.
    while tm > _MXU_ROW_ALIGN and (_vmem_need_bytes(tm, H, H4, w_bytes, True) * 5) // 4 > vmem_cap:
        tm = max(_MXU_ROW_ALIGN, tm // 2)

    n_pad = pl.cdiv(N, tm) * tm
    if n_pad != N:
        # Zero-padded tail tile instead of a ragged tm. LN of an all-zero row is finite
        # (epsilon inside the sqrt) and padded rows are sliced off below.
        filt = jnp.pad(filt, ((0, n_pad - N), (0, 0)))
        x = jnp.pad(x, ((0, n_pad - N), (0, 0)))

    cost = pl.CostEstimate(
        flops=4 * n_pad * H * H4,                     # the two matmuls
        transcendentals=n_pad * H4 + 2 * n_pad,       # erf on (N,4H) + two rsqrts per row
        bytes_accessed=(3 * n_pad * H * 4
                        + (H * H4 + H4 * H) * w_bytes
                        + (H4 + 5 * H) * 4),
    )

    args = (filt, x, prep["ln1_g"], prep["ln1_b"], w1, prep["b1"],
            w2, prep["b2"], prep["ln2_g"], prep["ln2_b"])

    def build(single_buffer_weights):
        need = _vmem_need_bytes(tm, H, H4, w_bytes, single_buffer_weights)
        vmem_limit = int(min(vmem_cap, max(32 * 1024 * 1024, (need * 5) // 4)))

        def const_spec(shape):
            # Constant-index-map operands never change across the row grid; single-buffer
            # them so resident weights don't eat 2x VMEM.
            if single_buffer_weights:
                return pl.BlockSpec(shape, lambda i: (0, 0), pipeline_mode=pl.Buffered(1))
            return pl.BlockSpec(shape, lambda i: (0, 0))

        def row_spec():
            return pl.BlockSpec((tm, H), lambda i: (i, 0))

        # TODO(synk): for H < 128 (demo only) the out tile forces masked vst.msk partial
        # stores; production H=768/1024 is lane-dense and needs no folding.
        return pl.pallas_call(
            fused_layer_kernel,
            out_shape=jax.ShapeDtypeStruct((n_pad, H), x.dtype),
            grid_spec=pltpu.PrefetchScalarGridSpec(
                num_scalar_prefetch=0,
                grid=(n_pad // tm,),
                in_specs=[
                    row_spec(),                 # filt row tile
                    row_spec(),                 # x row tile
                    const_spec((1, H)),         # LN1 weight
                    const_spec((1, H)),         # LN1 bias
                    const_spec((H, H4)),        # W1 (resident)
                    const_spec((1, H4)),        # b1
                    const_spec((H4, H)),        # W2 (resident)
                    const_spec((1, H)),         # b2
                    const_spec((1, H)),         # LN2 weight
                    const_spec((1, H)),         # LN2 bias
                ],
                out_specs=pl.BlockSpec((tm, H), lambda i: (i, 0)),
            ),
            compiler_params=pltpu.CompilerParams(
                dimension_semantics=("parallel",),
                vmem_limit_bytes=vmem_limit,
            ),
            cost_estimate=cost,
        )

    out = None
    if _SINGLE_BUFFER_WEIGHTS_OK:
        try:
            out = build(True)(*args)
        except Exception:
            # pipeline_mode / Buffered(1) not accepted on this jax build: fall back once.
            _SINGLE_BUFFER_WEIGHTS_OK = False
    if out is None:
        out = build(False)(*args)

    return out[:N] if n_pad != N else out


# ----------------------------- wrappers ---------------------------------------

def prepare_layer_params(p, compute_dtype=jnp.bfloat16):
    """Cast weights to the MXU compute dtype and reshape small params ONCE per forward
    (avoids re-emitting the f32->bf16 weight cast inside every per-layer call)."""
    H, H4 = p["w1"].shape
    return dict(
        filter_w=p["filter_w"],
        w1=p["w1"].astype(compute_dtype),
        w2=p["w2"].astype(compute_dtype),
        b1=p["b1"].reshape(1, H4).astype(jnp.float32),
        b2=p["b2"].reshape(1, H).astype(jnp.float32),
        ln1_g=p["ln1_g"].reshape(1, H).astype(jnp.float32),
        ln1_b=p["ln1_b"].reshape(1, H).astype(jnp.float32),
        ln2_g=p["ln2_g"].reshape(1, H).astype(jnp.float32),
        ln2_b=p["ln2_b"].reshape(1, H).astype(jnp.float32),
    )


def filter_spectral(x, complex_weight):
    """FilterLayer's frequency-domain mixing.
    TODO(synk): FFT has no Pallas/Mosaic primitive; rfft/irfft run as XLA ops."""
    B, S, H = x.shape
    w = complex_weight[..., 0] + 1j * complex_weight[..., 1]      # (1, S//2+1, H) complex
    xf = jnp.fft.rfft(x.astype(jnp.float32), axis=1, norm="ortho")
    return jnp.fft.irfft(xf * w, n=S, axis=1, norm="ortho")


def layer_forward(x, prep, *, tm=512):
    B, S, H = x.shape
    filt = filter_spectral(x, prep["filter_w"])
    out2 = fused_layer_forward(
        filt.reshape(B * S, H).astype(jnp.float32),
        x.reshape(B * S, H).astype(jnp.float32),
        prep, tm=tm)
    return out2.reshape(B, S, H)


def encoder_forward(x, layer_params, *, tm=512, compute_dtype=jnp.bfloat16,
                    output_all_encoded_layers=True):
    prepared = [prepare_layer_params(p, compute_dtype) for p in layer_params]
    all_encoder_layers = []
    h = x
    for prep in prepared:
        h = layer_forward(h, prep, tm=tm)
        if output_all_encoded_layers:
            all_encoder_layers.append(h)
    if not output_all_encoded_layers:
        all_encoder_layers.append(h)
    return all_encoder_layers


# ----------------------------- pure-JAX reference -----------------------------

def _ln_ref(y, gamma, beta, eps=1e-12):
    u = y.mean(-1, keepdims=True)
    s = ((y - u) ** 2).mean(-1, keepdims=True)
    return gamma * ((y - u) / jnp.sqrt(s + eps)) + beta


def reference_layer(x, p):
    filt = filter_spectral(x, p["filter_w"])
    h = _ln_ref(filt + x, p["ln1_g"], p["ln1_b"])
    a = _erf_gelu(jnp.dot(h, p["w1"], precision=lax.Precision.HIGHEST) + p["b1"])
    z = jnp.dot(a, p["w2"], precision=lax.Precision.HIGHEST) + p["b2"]
    return _ln_ref(z + h, p["ln2_g"], p["ln2_b"])


def reference_encoder(x, layer_params, output_all_encoded_layers=True):
    outs, h = [], x
    for p in layer_params:
        h = reference_layer(h, p)
        if output_all_encoded_layers:
            outs.append(h)
    if not output_all_encoded_layers:
        outs.append(h)
    return outs


# ----------------------------- demo / check -----------------------------------

if __name__ == "__main__":
    # Small shapes consistent with the module: batch=2, max_seq_len=seq=8, hidden=32, 2 layers
    B, S, H, n_layers = 2, 8, 32, 2
    H4 = 4 * H
    F = S // 2 + 1

    key = jax.random.PRNGKey(0)
    ks = jax.random.split(key, 8)
    x = jax.random.normal(ks[0], (B, S, H), dtype=jnp.float32)

    # One parameter set reused for all layers (torch Encoder deep-copies an
    # identically-initialized Layer). Weights stored transposed vs nn.Linear so
    # the kernel computes plain x @ W.
    bound1 = 1.0 / math.sqrt(H)
    bound2 = 1.0 / math.sqrt(H4)
    params = dict(
        filter_w=jax.random.normal(ks[1], (1, F, H, 2), dtype=jnp.float32) * 0.02,
        w1=jax.random.uniform(ks[2], (H, H4), minval=-bound1, maxval=bound1, dtype=jnp.float32),
        b1=jax.random.uniform(ks[3], (H4,), minval=-bound1, maxval=bound1, dtype=jnp.float32),
        w2=jax.random.uniform(ks[4], (H4, H), minval=-bound2, maxval=bound2, dtype=jnp.float32),
        b2=jax.random.uniform(ks[5], (H,), minval=-bound2, maxval=bound2, dtype=jnp.float32),
        ln1_g=jnp.ones((H,), dtype=jnp.float32), ln1_b=jnp.zeros((H,), dtype=jnp.float32),
        ln2_g=jnp.ones((H,), dtype=jnp.float32), ln2_b=jnp.zeros((H,), dtype=jnp.float32),
    )
    layer_params = [params for _ in range(n_layers)]

    refs = reference_encoder(x, layer_params)

    # 1) f32 compute path: tight correctness check vs the pure-JAX reference.
    outs_f32 = encoder_forward(x, layer_params, compute_dtype=jnp.float32)
    outs_f32 = jax.block_until_ready(outs_f32)
    assert len(outs_f32) == n_layers
    for o, r in zip(outs_f32, refs):
        assert o.shape == (B, S, H)
        assert jnp.allclose(o, r, atol=1e-3, rtol=1e-3), "f32 path mismatch vs reference"

    # 2) bf16-matmul / bf16-gelu production path: looser tolerance, MXU/VPU-friendly.
    outs_bf16 = encoder_forward(x, layer_params, compute_dtype=jnp.bfloat16)
    outs_bf16 = jax.block_until_ready(outs_bf16)
    for o, r in zip(outs_bf16, refs):
        assert o.shape == (B, S, H)
        assert jnp.allclose(o, r, atol=1e-1, rtol=1e-1), "bf16 path mismatch vs reference"

    print("KERNEL_OK")
</pallas_src>

<mosaic_0001>
module attributes {stable_mosaic.version = 11 : i64} {
  func.func @fused_layer_kernel(%arg0: i32, %arg1: memref<8x32xf32, #tpu.memory_space<vmem>>, %arg2: memref<8x32xf32, #tpu.memory_space<vmem>>, %arg3: memref<1x32xf32, #tpu.memory_space<vmem>>, %arg4: memref<1x32xf32, #tpu.memory_space<vmem>>, %arg5: memref<32x128xf32, #tpu.memory_space<vmem>>, %arg6: memref<1x128xf32, #tpu.memory_space<vmem>>, %arg7: memref<128x32xf32, #tpu.memory_space<vmem>>, %arg8: memref<1x32xf32, #tpu.memory_space<vmem>>, %arg9: memref<1x32xf32, #tpu.memory_space<vmem>>, %arg10: memref<1x32xf32, #tpu.memory_space<vmem>>, %arg11: memref<8x32xf32, #tpu.memory_space<vmem>>) attributes {dimension_semantics = [#tpu.dimension_semantics<parallel>], iteration_bounds = array<i64: 2>, scalar_prefetch = 0 : i64, scratch_operands = 0 : i64, tpu.core_type = #tpu.core_type<tc>, window_params = [{transform_indices = @transform_0, window_bounds = array<i64: 8, 32>}, {transform_indices = @transform_1, window_bounds = array<i64: 8, 32>}, {pipeline_mode = #tpu.pipeline_mode<synchronous>, transform_indices = @transform_2, window_bounds = array<i64: 1, 32>}, {pipeline_mode = #tpu.pipeline_mode<synchronous>, transform_indices = @transform_3, window_bounds = array<i64: 1, 32>}, {pipeline_mode = #tpu.pipeline_mode<synchronous>, transform_indices = @transform_4, window_bounds = array<i64: 32, 128>}, {pipeline_mode = #tpu.pipeline_mode<synchronous>, transform_indices = @transform_5, window_bounds = array<i64: 1, 128>}, {pipeline_mode = #tpu.pipeline_mode<synchronous>, transform_indices = @transform_6, window_bounds = array<i64: 128, 32>}, {pipeline_mode = #tpu.pipeline_mode<synchronous>, transform_indices = @transform_7, window_bounds = array<i64: 1, 32>}, {pipeline_mode = #tpu.pipeline_mode<synchronous>, transform_indices = @transform_8, window_bounds = array<i64: 1, 32>}, {pipeline_mode = #tpu.pipeline_mode<synchronous>, transform_indices = @transform_9, window_bounds = array<i64: 1, 32>}, {transform_indices = @transform_10, window_bounds = array<i64: 8, 32>}]} {
    %c0 = arith.constant 0 : index
    %c0_0 = arith.constant 0 : index
    %0 = vector.load %arg2[%c0, %c0_0] : memref<8x32xf32, #tpu.memory_space<vmem>>, vector<8x32xf32>
    %c0_1 = arith.constant 0 : index
    %c0_2 = arith.constant 0 : index
    %1 = vector.load %arg1[%c0_1, %c0_2] : memref<8x32xf32, #tpu.memory_space<vmem>>, vector<8x32xf32>
    %2 = arith.addf %1, %0 : vector<8x32xf32>
    %c0_3 = arith.constant 0 : index
    %c0_4 = arith.constant 0 : index
    %3 = vector.load %arg3[%c0_3, %c0_4] : memref<1x32xf32, #tpu.memory_space<vmem>>, vector<1x32xf32>
    %c0_5 = arith.constant 0 : index
    %c0_6 = arith.constant 0 : index
    %4 = vector.load %arg4[%c0_5, %c0_6] : memref<1x32xf32, #tpu.memory_space<vmem>>, vector<1x32xf32>
    %cst = arith.constant dense<0.000000e+00> : vector<8xf32>
    %5 = vector.multi_reduction <add>, %2, %cst [1] : vector<8x32xf32> to vector<8xf32>
    %6 = vector.shape_cast %5 : vector<8xf32> to vector<8x1xf32>
    %cst_7 = arith.constant 3.200000e+01 : f32
    %7 = vector.broadcast %cst_7 : f32 to vector<8x1xf32>
    %8 = arith.divf %6, %7 : vector<8x1xf32>
    %9 = vector.broadcast %8 : vector<8x1xf32> to vector<8x32xf32>
    %10 = arith.subf %2, %9 : vector<8x32xf32>
    %11 = arith.mulf %10, %10 : vector<8x32xf32>
    %cst_8 = arith.constant dense<0.000000e+00> : vector<8xf32>
    %12 = vector.multi_reduction <add>, %11, %cst_8 [1] : vector<8x32xf32> to vector<8xf32>
    %13 = vector.shape_cast %12 : vector<8xf32> to vector<8x1xf32>
    %cst_9 = arith.constant 3.200000e+01 : f32
    %14 = vector.broadcast %cst_9 : f32 to vector<8x1xf32>
    %15 = arith.divf %13, %14 : vector<8x1xf32>
    %16 = vector.broadcast %8 : vector<8x1xf32> to vector<8x32xf32>
    %17 = arith.subf %2, %16 : vector<8x32xf32>
    %cst_10 = arith.constant 9.99999996E-13 : f32
    %18 = vector.broadcast %cst_10 : f32 to vector<8x1xf32>
    %19 = arith.addf %15, %18 : vector<8x1xf32>
    %20 = math.rsqrt %19 : vector<8x1xf32>
    %21 = vector.broadcast %20 : vector<8x1xf32> to vector<8x32xf32>
    %22 = arith.mulf %17, %21 : vector<8x32xf32>
    %23 = vector.broadcast %3 : vector<1x32xf32> to vector<8x32xf32>
    %24 = arith.mulf %23, %22 : vector<8x32xf32>
    %25 = vector.broadcast %4 : vector<1x32xf32> to vector<8x32xf32>
    %26 = arith.addf %24, %25 : vector<8x32xf32>
    %c0_11 = arith.constant 0 : index
    %c0_12 = arith.constant 0 : index
    %27 = vector.load %arg5[%c0_11, %c0_12] : memref<32x128xf32, #tpu.memory_space<vmem>>, vector<32x128xf32>
    %cst_13 = arith.constant dense<0.000000e+00> : vector<8x128xf32>
    %28 = tpu.matmul %26, %27, %cst_13 {dimension_numbers = #tpu.dot_dimension_numbers<[1], [0], [0], [1], [0, 0, 1, 1], [], []>} : vector<8x32xf32>, vector<32x128xf32>, vector<8x128xf32> -> vector<8x128xf32>
    %c0_14 = arith.constant 0 : index
    %c0_15 = arith.constant 0 : index
    %29 = vector.load %arg6[%c0_14, %c0_15] : memref<1x128xf32, #tpu.memory_space<vmem>>, vector<1x128xf32>
    %30 = vector.broadcast %29 : vector<1x128xf32> to vector<8x128xf32>
    %31 = arith.addf %28, %30 : vector<8x128xf32>
    %cst_16 = arith.constant 5.000000e-01 : f32
    %32 = vector.broadcast %cst_16 : f32 to vector<8x128xf32>
    %33 = arith.mulf %31, %32 : vector<8x128xf32>
    %cst_17 = arith.constant 0.707106769 : f32
    %34 = vector.broadcast %cst_17 : f32 to vector<8x128xf32>
    %35 = arith.mulf %31, %34 : vector<8x128xf32>
    %36 = math.erf %35 : vector<8x128xf32>
    %cst_18 = arith.constant 1.000000e+00 : f32
    %37 = vector.broadcast %cst_18 : f32 to vector<8x128xf32>
    %38 = arith.addf %37, %36 : vector<8x128xf32>
    %39 = arith.mulf %33, %38 : vector<8x128xf32>
    %c0_19 = arith.constant 0 : index
    %c0_20 = arith.constant 0 : index
    %40 = vector.load %arg7[%c0_19, %c0_20] : memref<128x32xf32, #tpu.memory_space<vmem>>, vector<128x32xf32>
    %cst_21 = arith.constant dense<0.000000e+00> : vector<8x32xf32>
    %41 = tpu.matmul %39, %40, %cst_21 {dimension_numbers = #tpu.dot_dimension_numbers<[1], [0], [0], [1], [0, 0, 1, 1], [], []>} : vector<8x128xf32>, vector<128x32xf32>, vector<8x32xf32> -> vector<8x32xf32>
    %c0_22 = arith.constant 0 : index
    %c0_23 = arith.constant 0 : index
    %42 = vector.load %arg8[%c0_22, %c0_23] : memref<1x32xf32, #tpu.memory_space<vmem>>, vector<1x32xf32>
    %43 = vector.broadcast %42 : vector<1x32xf32> to vector<8x32xf32>
    %44 = arith.addf %41, %43 : vector<8x32xf32>
    %45 = arith.addf %44, %26 : vector<8x32xf32>
    %c0_24 = arith.constant 0 : index
    %c0_25 = arith.constant 0 : index
    %46 = vector.load %arg9[%c0_24, %c0_25] : memref<1x32xf32, #tpu.memory_space<vmem>>, vector<1x32xf32>
    %c0_26 = arith.constant 0 : index
    %c0_27 = arith.constant 0 : index
    %47 = vector.load %arg10[%c0_26, %c0_27] : memref<1x32xf32, #tpu.memory_space<vmem>>, vector<1x32xf32>
    %cst_28 = arith.constant dense<0.000000e+00> : vector<8xf32>
    %48 = vector.multi_reduction <add>, %45, %cst_28 [1] : vector<8x32xf32> to vector<8xf32>
    %49 = vector.shape_cast %48 : vector<8xf32> to vector<8x1xf32>
    %cst_29 = arith.constant 3.200000e+01 : f32
    %50 = vector.broadcast %cst_29 : f32 to vector<8x1xf32>
    %51 = arith.divf %49, %50 : vector<8x1xf32>
    %52 = vector.broadcast %51 : vector<8x1xf32> to vector<8x32xf32>
    %53 = arith.subf %45, %52 : vector<8x32xf32>
    %54 = arith.mulf %53, %53 : vector<8x32xf32>
    %cst_30 = arith.constant dense<0.000000e+00> : vector<8xf32>
    %55 = vector.multi_reduction <add>, %54, %cst_30 [1] : vector<8x32xf32> to vector<8xf32>
    %56 = vector.shape_cast %55 : vector<8xf32> to vector<8x1xf32>
    %cst_31 = arith.constant 3.200000e+01 : f32
    %57 = vector.broadcast %cst_31 : f32 to vector<8x1xf32>
    %58 = arith.divf %56, %57 : vector<8x1xf32>
    %59 = vector.broadcast %51 : vector<8x1xf32> to vector<8x32xf32>
    %60 = arith.subf %45, %59 : vector<8x32xf32>
    %cst_32 = arith.constant 9.99999996E-13 : f32
    %61 = vector.broadcast %cst_32 : f32 to vector<8x1xf32>
    %62 = arith.addf %58, %61 : vector<8x1xf32>
    %63 = math.rsqrt %62 : vector<8x1xf32>
    %64 = vector.broadcast %63 : vector<8x1xf32> to vector<8x32xf32>
    %65 = arith.mulf %60, %64 : vector<8x32xf32>
    %66 = vector.broadcast %46 : vector<1x32xf32> to vector<8x32xf32>
    %67 = arith.mulf %66, %65 : vector<8x32xf32>
    %68 = vector.broadcast %47 : vector<1x32xf32> to vector<8x32xf32>
    %69 = arith.addf %67, %68 : vector<8x32xf32>
    %c0_33 = arith.constant 0 : index
    %c0_34 = arith.constant 0 : index
    %70 = vector.load %arg11[%c0_33, %c0_34] : memref<8x32xf32, #tpu.memory_space<vmem>>, vector<8x32xf32>
    tpu.vector_store %arg11[%c0_33, %c0_34], %69 {strides = array<i32>} : memref<8x32xf32, #tpu.memory_space<vmem>>, vector<8x32xf32>,
    return
  }
  func.func @transform_0(%arg0: i32) -> (i32, i32) {
    %c0_i32 = arith.constant 0 : i32
    %c0_i32_0 = arith.constant 0 : i32
    return %arg0, %c0_i32 : i32, i32
  }
  func.func @transform_1(%arg0: i32) -> (i32, i32) {
    %c0_i32 = arith.constant 0 : i32
    %c0_i32_0 = arith.constant 0 : i32
    return %arg0, %c0_i32 : i32, i32
  }
  func.func @transform_2(%arg0: i32) -> (i32, i32) {
    %c0_i32 = arith.constant 0 : i32
    %c0_i32_0 = arith.constant 0 : i32
    %c0_i32_1 = arith.constant 0 : i32
    return %c0_i32, %c0_i32_0 : i32, i32
  }
  func.func @transform_3(%arg0: i32) -> (i32, i32) {
    %c0_i32 = arith.constant 0 : i32
    %c0_i32_0 = arith.constant 0 : i32
    %c0_i32_1 = arith.constant 0 : i32
    return %c0_i32, %c0_i32_0 : i32, i32
  }
  func.func @transform_4(%arg0: i32) -> (i32, i32) {
    %c0_i32 = arith.constant 0 : i32
    %c0_i32_0 = arith.constant 0 : i32
    %c0_i32_1 = arith.constant 0 : i32
    return %c0_i32, %c0_i32_0 : i32, i32
  }
  func.func @transform_5(%arg0: i32) -> (i32, i32) {
    %c0_i32 = arith.constant 0 : i32
    %c0_i32_0 = arith.constant 0 : i32
    %c0_i32_1 = arith.constant 0 : i32
    return %c0_i32, %c0_i32_0 : i32, i32
  }
  func.func @transform_6(%arg0: i32) -> (i32, i32) {
    %c0_i32 = arith.constant 0 : i32
    %c0_i32_0 = arith.constant 0 : i32
    %c0_i32_1 = arith.constant 0 : i32
    return %c0_i32, %c0_i32_0 : i32, i32
  }
  func.func @transform_7(%arg0: i32) -> (i32, i32) {
    %c0_i32 = arith.constant 0 : i32
    %c0_i32_0 = arith.constant 0 : i32
    %c0_i32_1 = arith.constant 0 : i32
    return %c0_i32, %c0_i32_0 : i32, i32
  }
  func.func @transform_8(%arg0: i32) -> (i32, i32) {
    %c0_i32 = arith.constant 0 : i32
    %c0_i32_0 = arith.constant 0 : i32
    %c0_i32_1 = arith.constant 0 : i32
    return %c0_i32, %c0_i32_0 : i32, i32
  }
  func.func @transform_9(%arg0: i32) -> (i32, i32) {
    %c0_i32 = arith.constant 0 : i32
    %c0_i32_0 = arith.constant 0 : i32
    %c0_i32_1 = arith.constant 0 : i32
    return %c0_i32, %c0_i32_0 : i32, i32
  }
  func.func @transform_10(%arg0: i32) -> (i32, i32) {
    %c0_i32 = arith.constant 0 : i32
    %c0_i32_0 = arith.constant 0 : i32
    return %arg0, %c0_i32 : i32, i32
  }
}

module attributes {stable_mosaic.version = 11 : i64} {
  func.func @fused_layer_kernel(%arg0: i32, %arg1: memref<8x32xf32, #tpu.memory_space<vmem>>, %arg2: memref<8x32xf32, #tpu.memory_space<vmem>>, %arg3: memref<1x32xf32, #tpu.memory_space<vmem>>, %arg4: memref<1x32xf32, #tpu.memory_space<vmem>>, %arg5: memref<32x128xf32, #tpu.memory_space<vmem>>, %arg6: memref<1x128xf32, #tpu.memory_space<vmem>>, %arg7: memref<128x32xf32, #tpu.memory_space<vmem>>, %arg8: memref<1x32xf32, #tpu.memory_space<vmem>>, %arg9: memref<1x32xf32, #tpu.memory_space<vmem>>, %arg10: memref<1x32xf32, #tpu.memory_space<vmem>>, %arg11: memref<8x32xf32, #tpu.memory_space<vmem>>) attributes {dimension_semantics = [#tpu.dimension_semantics<parallel>], iteration_bounds = array<i64: 2>, scalar_prefetch = 0 : i64, scratch_operands = 0 : i64, tpu.core_type = #tpu.core_type<tc>, window_params = [{transform_indices = @transform_0, window_bounds = array<i64: 8, 32>}, {transform_indices = @transform_1, window_bounds = array<i64: 8, 32>}, {pipeline_mode = #tpu.pipeline_mode<synchronous>, transform_indices = @transform_2, window_bounds = array<i64: 1, 32>}, {pipeline_mode = #tpu.pipeline_mode<synchronous>, transform_indices = @transform_3, window_bounds = array<i64: 1, 32>}, {pipeline_mode = #tpu.pipeline_mode<synchronous>, transform_indices = @transform_4, window_bounds = array<i64: 32, 128>}, {pipeline_mode = #tpu.pipeline_mode<synchronous>, transform_indices = @transform_5, window_bounds = array<i64: 1, 128>}, {pipeline_mode = #tpu.pipeline_mode<synchronous>, transform_indices = @transform_6, window_bounds = array<i64: 128, 32>}, {pipeline_mode = #tpu.pipeline_mode<synchronous>, transform_indices = @transform_7, window_bounds = array<i64: 1, 32>}, {pipeline_mode = #tpu.pipeline_mode<synchronous>, transform_indices = @transform_8, window_bounds = array<i64: 1, 32>}, {pipeline_mode = #tpu.pipeline_mode<synchronous>, transform_indices = @transform_9, window_bounds = array<i64: 1, 32>}, {transform_indices = @transform_10, window_bounds = array<i64: 8, 32>}]} {
    %c0 = arith.constant 0 : index
    %c0_0 = arith.constant 0 : index
    %0 = vector.load %arg2[%c0, %c0_0] : memref<8x32xf32, #tpu.memory_space<vmem>>, vector<8x32xf32>
    %c0_1 = arith.constant 0 : index
    %c0_2 = arith.constant 0 : index
    %1 = vector.load %arg1[%c0_1, %c0_2] : memref<8x32xf32, #tpu.memory_space<vmem>>, vector<8x32xf32>
    %2 = arith.addf %1, %0 : vector<8x32xf32>
    %c0_3 = arith.constant 0 : index
    %c0_4 = arith.constant 0 : index
    %3 = vector.load %arg3[%c0_3, %c0_4] : memref<1x32xf32, #tpu.memory_space<vmem>>, vector<1x32xf32>
    %c0_5 = arith.constant 0 : index
    %c0_6 = arith.constant 0 : index
    %4 = vector.load %arg4[%c0_5, %c0_6] : memref<1x32xf32, #tpu.memory_space<vmem>>, vector<1x32xf32>
    %cst = arith.constant dense<0.000000e+00> : vector<8xf32>
    %5 = vector.multi_reduction <add>, %2, %cst [1] : vector<8x32xf32> to vector<8xf32>
    %6 = vector.shape_cast %5 : vector<8xf32> to vector<8x1xf32>
    %cst_7 = arith.constant 3.200000e+01 : f32
    %7 = vector.broadcast %cst_7 : f32 to vector<8x1xf32>
    %8 = arith.divf %6, %7 : vector<8x1xf32>
    %9 = vector.broadcast %8 : vector<8x1xf32> to vector<8x32xf32>
    %10 = arith.subf %2, %9 : vector<8x32xf32>
    %11 = arith.mulf %10, %10 : vector<8x32xf32>
    %cst_8 = arith.constant dense<0.000000e+00> : vector<8xf32>
    %12 = vector.multi_reduction <add>, %11, %cst_8 [1] : vector<8x32xf32> to vector<8xf32>
    %13 = vector.shape_cast %12 : vector<8xf32> to vector<8x1xf32>
    %cst_9 = arith.constant 3.200000e+01 : f32
    %14 = vector.broadcast %cst_9 : f32 to vector<8x1xf32>
    %15 = arith.divf %13, %14 : vector<8x1xf32>
    %16 = vector.broadcast %8 : vector<8x1xf32> to vector<8x32xf32>
    %17 = arith.subf %2, %16 : vector<8x32xf32>
    %cst_10 = arith.constant 9.99999996E-13 : f32
    %18 = vector.broadcast %cst_10 : f32 to vector<8x1xf32>
    %19 = arith.addf %15, %18 : vector<8x1xf32>
    %20 = math.rsqrt %19 : vector<8x1xf32>
    %21 = vector.broadcast %20 : vector<8x1xf32> to vector<8x32xf32>
    %22 = arith.mulf %17, %21 : vector<8x32xf32>
    %23 = vector.broadcast %3 : vector<1x32xf32> to vector<8x32xf32>
    %24 = arith.mulf %23, %22 : vector<8x32xf32>
    %25 = vector.broadcast %4 : vector<1x32xf32> to vector<8x32xf32>
    %26 = arith.addf %24, %25 : vector<8x32xf32>
    %c0_11 = arith.constant 0 : index
    %c0_12 = arith.constant 0 : index
    %27 = vector.load %arg5[%c0_11, %c0_12] : memref<32x128xf32, #tpu.memory_space<vmem>>, vector<32x128xf32>
    %cst_13 = arith.constant dense<0.000000e+00> : vector<8x128xf32>
    %28 = tpu.matmul %26, %27, %cst_13 {dimension_numbers = #tpu.dot_dimension_numbers<[1], [0], [0], [1], [0, 0, 1, 1], [], []>} : vector<8x32xf32>, vector<32x128xf32>, vector<8x128xf32> -> vector<8x128xf32>
    %c0_14 = arith.constant 0 : index
    %c0_15 = arith.constant 0 : index
    %29 = vector.load %arg6[%c0_14, %c0_15] : memref<1x128xf32, #tpu.memory_space<vmem>>, vector<1x128xf32>
    %30 = vector.broadcast %29 : vector<1x128xf32> to vector<8x128xf32>
    %31 = arith.addf %28, %30 : vector<8x128xf32>
    %cst_16 = arith.constant 5.000000e-01 : f32
    %32 = vector.broadcast %cst_16 : f32 to vector<8x128xf32>
    %33 = arith.mulf %31, %32 : vector<8x128xf32>
    %cst_17 = arith.constant 0.707106769 : f32
    %34 = vector.broadcast %cst_17 : f32 to vector<8x128xf32>
    %35 = arith.mulf %31, %34 : vector<8x128xf32>
    %36 = math.erf %35 : vector<8x128xf32>
    %cst_18 = arith.constant 1.000000e+00 : f32
    %37 = vector.broadcast %cst_18 : f32 to vector<8x128xf32>
    %38 = arith.addf %37, %36 : vector<8x128xf32>
    %39 = arith.mulf %33, %38 : vector<8x128xf32>
    %c0_19 = arith.constant 0 : index
    %c0_20 = arith.constant 0 : index
    %40 = vector.load %arg7[%c0_19, %c0_20] : memref<128x32xf32, #tpu.memory_space<vmem>>, vector<128x32xf32>
    %cst_21 = arith.constant dense<0.000000e+00> : vector<8x32xf32>
    %41 = tpu.matmul %39, %40, %cst_21 {dimension_numbers = #tpu.dot_dimension_numbers<[1], [0], [0], [1], [0, 0, 1, 1], [], []>} : vector<8x128xf32>, vector<128x32xf32>, vector<8x32xf32> -> vector<8x32xf32>
    %c0_22 = arith.constant 0 : index
    %c0_23 = arith.constant 0 : index
    %42 = vector.load %arg8[%c0_22, %c0_23] : memref<1x32xf32, #tpu.memory_space<vmem>>, vector<1x32xf32>
    %43 = vector.broadcast %42 : vector<1x32xf32> to vector<8x32xf32>
    %44 = arith.addf %41, %43 : vector<8x32xf32>
    %45 = arith.addf %44, %26 : vector<8x32xf32>
    %c0_24 = arith.constant 0 : index
    %c0_25 = arith.constant 0 : index
    %46 = vector.load %arg9[%c0_24, %c0_25] : memref<1x32xf32, #tpu.memory_space<vmem>>, vector<1x32xf32>
    %c0_26 = arith.constant 0 : index
    %c0_27 = arith.constant 0 : index
    %47 = vector.load %arg10[%c0_26, %c0_27] : memref<1x32xf32, #tpu.memory_space<vmem>>, vector<1x32xf32>
    %cst_28 = arith.constant dense<0.000000e+00> : vector<8xf32>
    %48 = vector.multi_reduction <add>, %45, %cst_28 [1] : vector<8x32xf32> to vector<8xf32>
    %49 = vector.shape_cast %48 : vector<8xf32> to vector<8x1xf32>
    %cst_29 = arith.constant 3.200000e+01 : f32
    %50 = vector.broadcast %cst_29 : f32 to vector<8x1xf32>
    %51 = arith.divf %49, %50 : vector<8x1xf32>
    %52 = vector.broadcast %51 : vector<8x1xf32> to vector<8x32xf32>
    %53 = arith.subf %45, %52 : vector<8x32xf32>
    %54 = arith.mulf %53, %53 : vector<8x32xf32>
    %cst_30 = arith.constant dense<0.000000e+00> : vector<8xf32>
    %55 = vector.multi_reduction <add>, %54, %cst_30 [1] : vector<8x32xf32> to vector<8xf32>
    %56 = vector.shape_cast %55 : vector<8xf32> to vector<8x1xf32>
    %cst_31 = arith.constant 3.200000e+01 : f32
    %57 = vector.broadcast %cst_31 : f32 to vector<8x1xf32>
    %58 = arith.divf %56, %57 : vector<8x1xf32>
    %59 = vector.broadcast %51 : vector<8x1xf32> to vector<8x32xf32>
    %60 = arith.subf %45, %59 : vector<8x32xf32>
    %cst_32 = arith.constant 9.99999996E-13 : f32
    %61 = vector.broadcast %cst_32 : f32 to vector<8x1xf32>
    %62 = arith.addf %58, %61 : vector<8x1xf32>
    %63 = math.rsqrt %62 : vector<8x1xf32>
    %64 = vector.broadcast %63 : vector<8x1xf32> to vector<8x32xf32>
    %65 = arith.mulf %60, %64 : vector<8x32xf32>
    %66 = vector.broadcast %46 : vector<1x32xf32> to vector<8x32xf32>
    %67 = arith.mulf %66, %65 : vector<8x32xf32>
    %68 = vector.broadcast %47 : vector<1x32xf32> to vector<8x32xf32>
    %69 = arith.addf %67, %68 : vector<8x32xf32>
    %c0_33 = arith.constant 0 : index
    %c0_34 = arith.constant 0 : index
    %70 = vector.load %arg11[%c0_33, %c0_34] : memref<8x32xf32, #tpu.memory_space<vmem>>, vector<8x32xf32>
    tpu.vector_store %arg11[%c0_33, %c0_34], %69 {strides = array<i32>} : memref<8x32xf32, #tpu.memory_space<vmem>>, vector<8x32xf32>,
    return
  }
  func.func @transform_0(%arg0: i32) -> (i32, i32) {
    %c0_i32 = arith.constant 0 : i32
    %c0_i32_0 = arith.constant 0 : i32
    return %arg0, %c0_i32 : i32, i32
  }
  func.func @transform_1(%arg0: i32) -> (i32, i32) {
    %c0_i32 = arith.constant 0 : i32
    %c0_i32_0 = arith.constant 0 : i32
    return %arg0, %c0_i32 : i32, i32
  }
  func.func @transform_2(%arg0: i32) -> (i32, i32) {
    %c0_i32 = arith.constant 0 : i32
    %c0_i32_0 = arith.constant 0 : i32
    %c0_i32_1 = arith.constant 0 : i32
    return %c0_i32, %c0_i32_0 : i32, i32
  }
  func.func @transform_3(%arg0: i32) -> (i32, i32) {
    %c0_i32 = arith.constant 0 : i32
    %c0_i32_0 = arith.constant 0 : i32
    %c0_i32_1 = arith.constant 0 : i32
    return %c0_i32, %c0_i32_0 : i32, i32
  }
  func.func @transform_4(%arg0: i32) -> (i32, i32) {
    %c0_i32 = arith.constant 0 : i32
    %c0_i32_0 = arith.constant 0 : i32
    %c0_i32_1 = arith.constant 0 : i32
    return %c0_i32, %c0_i32_0 : i32, i32
  }
  func.func @transform_5(%arg0: i32) -> (i32, i32) {
    %c0_i32 = arith.constant 0 : i32
    %c0_i32_0 = arith.constant 0 : i32
    %c0_i32_1 = arith.constant 0 : i32
    return %c0_i32, %c0_i32_0 : i32, i32
  }
  func.func @transform_6(%arg0: i32) -> (i32, i32) {
    %c0_i32 = arith.constant 0 : i32
    %c0_i32_0 = arith.constant 0 : i32
    %c0_i32_1 = arith.constant 0 : i32
    return %c0_i32, %c0_i32_0 : i32, i32
  }
  func.func @transform_7(%arg0: i32) -> (i32, i32) {
    %c0_i32 = arith.constant 0 : i32
    %c0_i32_0 = arith.constant 0 : i32
    %c0_i32_1 = arith.constant 0 : i32
    return %c0_i32, %c0_i32_0 : i32, i32
  }
  func.func @transform_8(%arg0: i32) -> (i32, i32) {
    %c0_i32 = arith.constant 0 : i32
    %c0_i32_0 = arith.constant 0 : i32
    %c0_i32_1 = arith.constant 0 : i32
    return %c0_i32, %c0_i32_0 : i32, i32
  }
  func.func @transform_9(%arg0: i32) -> (i32, i32) {
    %c0_i32 = arith.constant 0 : i32
    %c0_i32_0 = arith.constant 0 : i32
    %c0_i32_1 = arith.constant 0 : i32
    return %c0_i32, %c0_i32_0 : i32, i32
  }
  func.func @transform_10(%arg0: i32) -> (i32, i32) {
    %c0_i32 = arith.constant 0 : i32
    %c0_i32_0 = arith.constant 0 : i32
    return %arg0, %c0_i32 : i32, i32
  }
}

</mosaic_0001>

<bundles_post_ra>
// kernel: tpu_custom_call.1
= control target key start
LH: loop header
LB: loop body
LE: loop exit
PB: predicated region body
PF: predicated region fallthrough
CT: control target
= control target key end

     0   :  { %s1020_s0 = inlined_call_operand.vmem [shape: f32[16,32], index: 0, kind: input, shape index: {}]   ;;  %s1021_s1 = inlined_call_operand.vmem [shape: f32[16,32], index: 1, kind: input, shape index: {}]   ;;  %s1022_s2 = inlined_call_operand.vmem [shape: f32[1,32], index: 2, kind: input, shape index: {}]   ;;  %s1023_s3 = inlined_call_operand.vmem [shape: f32[1,32], index: 3, kind: input, shape index: {}]   ;;  %s1024_s4 = inlined_call_operand.vmem [shape: f32[32,128], index: 4, kind: input, shape index: {}]   ;;  %s1025_s5 = inlined_call_operand.vmem [shape: f32[1,128], index: 5, kind: input, shape index: {}]   ;;  %s1026_s6 = inlined_call_operand.vmem [shape: f32[128,32], index: 6, kind: input, shape index: {}]   ;;  %s1027_s7 = inlined_call_operand.vmem [shape: f32[1,32], index: 7, kind: input, shape index: {}]   ;;  %s1028_s8 = inlined_call_operand.vmem [shape: f32[1,32], index: 8, kind: input, shape index: {}]   ;;  %s1029_s9 = inlined_call_operand.vmem [shape: f32[1,32], index: 9, kind: input, shape index: {}]   ;;  %s1030_s10 = inlined_call_operand.hbm [shape: f32[16,32], index: 10, kind: output, shape index: {}]  }
   0x1   :  { %1031 = sst [smem:[#allocation5_spill]] %s1020_s0 }
   0x2   :  { %15 = vsyncpa [#allocation3], 0 }
   0x3   :  { %17 = vsyncpa [#allocation3 + $0x1], 0  ;;  %s838_s13 = smov 0   ;;  %s840_s14 = smov 0  }
   0x4   :  { %s842_s15 = smov 0   ;;  %s844_s16 = smov 0  }
   0x5 LB: > { %s859_s17 = sadd.s32 4294967295, %s780_s16   ;;  %s651_s18 = sadd.s32 4294967294, %s780_s16   ;;  %s780_s16 = sphi %s844_s16, %s1038_s16   ;;  %s776_s15 = sphi %s842_s15, %s1037_s15   ;;  %s772_s14 = sphi %s840_s14, %s1036_s14   ;;  %s768_s13 = sphi %s838_s13, %s1035_s13  }
   0x6   : > { %s863_s19 = sadd.s32 1, %s780_s16   ;;  %s250_s20 = sadd.s32 1, %s776_s15 }
   0x7   : > { %s247_s21 = ssub.s32 %s780_s16, %s863_s19  ;;  %p260_p0 = scmp.ne.s32.totalorder %s776_s15, %s772_s14 }
   0x8   : > { %p248_p1 = scmp.eq.s32.totalorder %s247_s21, 0  ;;  %p261_p2 = scmp.eq.s32.totalorder %s859_s17, 1 }
   0x9   : > { %p266_p3 = scmp.ne.s32.totalorder %s772_s14, %s768_s13  ;;  %p267_p4 = scmp.eq.s32.totalorder %s651_s18, 1 }
   0xa   : > { %s874_s22 = scalar_select %p248_p1, %s776_s15, %s250_s20  }
   0xb   : > { %p876_p5 = por %p261_p2, %p260_p0  ;;  %p880_p6 = por %p267_p4, %p266_p3 }
   0xc   : > { %p654_p7 = scmp.ge.s32.totalorder %s780_s16, 1  ;;  %p323_p8 = scmp.lt.s32.totalorder %s780_s16, 3 }
   0xe   : > { %p324_p9 = pnand %p654_p7, %p323_p8 }
   0xf   : > { %p364_p10 = scmp.lt.s32.totalorder (!%p324_p9), %s859_s17, 1  ;;  %s1034_s0 = sld [smem:[#allocation5_spill]] (!%p324_p9) }
  0x10   : > { %327 = sbr.rel (%p324_p9) target bundleno = 877 (0x36d), region = 60  ;;  %s661_s28 = sshll.u32 (!%p324_p9), %s859_s17, 3 }
  0x11   : > { %s575_s18 = scalar_lea.hbm (!%p324_p9), %s1030_s10, %s661_s28 }
  0x15   : > { %s365_s25 = scalar_select %p364_p10, %s859_s17, 1  ;;  %vm377_vm0 = vcmask 261120   ;;  %v782_v4 = vmov 32.0   ;;  %v418_v16 = vld [vmem:[%s1024_s4 + $0x18] sm:$0xff]  ;;  %v417_v17 = vld [vmem:[%s1024_s4 + $0x10] sm:$0xff]  ;;  %v416_v18 = vld [vmem:[%s1024_s4 + $0x8] sm:$0xff] }
  0x16   : > { %710 = vrcp.f32 %v782_v4  ;;  %438 = vmatpush.msra.mxu0 %v418_v16  ;;  %v415_v19 = vld [vmem:[%s1024_s4] sm:$0xff]  ;;  %v505_v35 = vld [vmem:[%s1026_s6 + $0x78] sm:$0xff]  ;;  %v504_v36 = vld [vmem:[%s1026_s6 + $0x70] sm:$0xff] }
  0x17   : > { %s656_s26 = sshll.u32 %s365_s25, 3  ;;  %v704_v29 = vld [vmem:[%s1022_s2] ss:$0 sm:$0xff]  ;;  %510 = vmatpush.msra.mxu1 %v505_v35  ;;  %v503_v37 = vld [vmem:[%s1026_s6 + $0x68] sm:$0xff]  ;;  %v501_v40 = vld [vmem:[%s1026_s6 + $0x58] sm:$0xff] }
  0x18   : > { %s367_s29 = scalar_lea.vmem %s1034_s0, %s656_s26  ;;  %s371_s12 = scalar_lea.vmem %s1021_s1, %s656_s26  ;;  %439 = vmatpush.msra.mxu0 %v417_v17  ;;  %v705_v32 = vld [vmem:[%s1023_s3] ss:$0 sm:$0xff]  ;;  %v500_v41 = vld [vmem:[%s1026_s6 + $0x50] sm:$0xff]  ;;  %v499_v43 = vld [vmem:[%s1026_s6 + $0x48] sm:$0xff] }
  0x19   : > { %v372_v0 = vld [vmem:[%s371_s12] sm:$0xff]  ;;  %511 = vmatpush.msra.mxu1 %v504_v36  ;;  %v497_v47 = vld [vmem:[%s1026_s6 + $0x38] sm:$0xff]  ;;  %v496_v49 = vld [vmem:[%s1026_s6 + $0x30] sm:$0xff]  ;;  %s361_s26 = sand.u32 1, %s772_s14   ;;  %s579_s0 = sshll.u32 %s575_s18, 4  ;;  %s580_s0 = int_to_ptr.hbm [resolvable:$true] %s579_s0 }
  0x1a   : > { %v373_v1 = vld [vmem:[%s367_s29] sm:$0xff]  ;;  %440 = vmatpush.msra.mxu0 %v416_v18  ;;  %v495_v51 = vld [vmem:[%s1026_s6 + $0x28] sm:$0xff]  ;;  %v493_v57 = vld [vmem:[%s1026_s6 + $0x18] sm:$0xff]  ;;  %s655_s27 = sshll.u32 %s361_s26, 3  ;;  %s565_s29 = scalar_lea.sflag [#allocation3], %s361_s26 }
  0x1b   : > { %v374_v2 = vadd.f32 %v373_v1, %v372_v0  ;;  %512 = vmatpush.msra.mxu1 %v503_v37  ;;  %v502_v38 = vld [vmem:[%s1026_s6 + $0x60] sm:$0xff]  ;;  %v492_v60 = vld [vmem:[%s1026_s6 + $0x10] sm:$0xff]  ;;  %v491_v63 = vld [vmem:[%s1026_s6 + $0x8] sm:$0xff]  ;;  %s363_s25 = scalar_lea.vmem [#allocation2], %s655_s27  ;;  %s732_s30 = sshra.s32 %s580_s0, 4  ;;  %s733_s30 = int_to_ptr.hbm [resolvable:$true] %s732_s30 }
  0x1c   : > { %v711_v5 = vpop.eup %710  ;;  %441 = vmatpush.msra.mxu0 %v415_v19  ;;  %v706_v39 = vld [vmem:[%s1025_s5] ss:$0 sm:$0xff]  ;;  %s577_s17 = sshll.u32 %s363_s25, 4  ;;  %s734_s28 = scalar_lea.hbm %s733_s30, 8  ;;  %s578_s17 = int_to_ptr.vmem [resolvable:$true] %s577_s17 }
  0x1d   : > { %v378_v3 = vsel %vm377_vm0, %v374_v2, 0.0  ;;  %v382_v6 = vmul.f32 32.0, %v711_v5  ;;  %vm386_vm1 = vweird.f32 %v711_v5  ;;  %513 = vmatpush.msra.mxu1 %v502_v38  ;;  %v498_v45 = vld [vmem:[%s1026_s6 + $0x40] sm:$0xff]  ;;  %p735_p11 = scmp.ne.s32.totalorder %s733_s30, %s734_s28  ;;  %s738_s27 = scalar_lea.hbm %s1030_s10, 16 }
  0x1e   : > { %379 = vadd.xlane.f32.xlu0 %v378_v3  ;;  %v494_v54 = vld [vmem:[%s1026_s6 + $0x20] sm:$0xff]  ;;  %p739_p0 = scmp.lt.s32.totalorder %s733_s30, %s1030_s10  ;;  %p740_p1 = scmp.lt.s32.totalorder %s738_s27, %s734_s28 }
  0x1f   : > { %v383_v7 = vsub.f32 1.0, %v382_v6  ;;  %514 = vmatpush.msra.mxu1 %v501_v40  ;;  %v490_v1 = vld [vmem:[%s1026_s6] sm:$0xff]  ;;  %p736_p12 = pnand %p735_p11, %p876_p5 }
  0x20   : > { %p741_p2 = por %p740_p1, %p739_p0 }
  0x21   : > { %v384_v8 = vmul.f32 %v711_v5, %v383_v7  ;;  %515 = vmatpush.msra.mxu1 %v500_v41  ;;  %p737_p13 = pneg %p736_p12 }
  0x23   : > { %v385_v9 = vadd.f32 %v711_v5, %v384_v8  ;;  %516 = vmatpush.msra.mxu1 %v499_v43  ;;  %p742_p3 = pnand %p741_p2, %p737_p13 }
  0x25   : > { %v895_v10 = vsel %vm386_vm1, %v711_v5, %v385_v9  ;;  %517 = vmatpush.msra.mxu1 %v498_v45 }
  0x27   : > { %518 = vmatpush.msra.mxu1 %v497_v47 }
  0x29   : > { %519 = vmatpush.msra.mxu1 %v496_v49  ;;  %v708_v49 = vld [vmem:[%s1028_s8] ss:$0 sm:$0xff] }
  0x2b   : > { %520 = vmatpush.msra.mxu1 %v495_v51  ;;  %v709_v51 = vld [vmem:[%s1029_s9] ss:$0 sm:$0xff] }
  0x2d   : > { %521 = vmatpush.msra.mxu1 %v494_v54 }
  0x2f   : > { %522 = vmatpush.msra.mxu1 %v493_v57 }
  0x31   : > { %523 = vmatpush.msra.mxu1 %v492_v60 }
  0x33   : > { %524 = vmatpush.msra.mxu1 %v491_v63 }
  0x35   : > { %525 = vmatpush.msra.mxu1 %v490_v1 }
  0x91   : > { %v380_v11 = vpop.xlane.xlu0 %379 }
  0x92   : > { %v388_v12 = vmul.f32 %v895_v10, %v380_v11 }
  0x94   : > { %v389_v13 = vsub.f32 %v374_v2, %v388_v12 }
  0x96   : > { %v390_v14 = vmul.f32 %v389_v13, %v389_v13 }
  0x98   : > { %v391_v15 = vsel %vm377_vm0, %v390_v14, 0.0 }
  0x99   : > { %392 = vadd.xlane.f32.xlu0 %v391_v15 }
 0x10c   : > { %v393_v20 = vpop.xlane.xlu0 %392 }
 0x10d   : > { %v394_v21 = vmul.f32 %v393_v20, %v895_v10 }
 0x10f   : > { %v395_v22 = vadd.f32 1e-12, %v394_v21 }
 0x111   : > { %712 = vrsqrt.f32 %v395_v22  ;;  %vm402_vm3 = vweird.f32 %v395_v22 }
 0x117   : > { %v713_v23 = vpop.eup %712 }
 0x118   : > { %v397_v24 = vmul.f32 %v713_v23, %v395_v22  ;;  %vm403_vm2 = vweird.f32 %v713_v23 }
 0x119   : > { %vm404_vm4 = vmor %vm402_vm3, %vm403_vm2 }
 0x11a   : > { %v398_v25 = vmul.f32 %v713_v23, %v397_v24 }
 0x11c   : > { %v399_v26 = vmul.f32 0.5, %v398_v25 }
 0x11e   : > { %v400_v27 = vsub.f32 1.5, %v399_v26 }
 0x120   : > { %v401_v28 = vmul.f32 %v713_v23, %v400_v27 }
 0x122   : > { %v405_v30 = vsel %vm404_vm4, %v713_v23, %v401_v28 }
 0x123   : > { %v406_v31 = vmul.f32 %v405_v30, %v389_v13  ;;  %v707_v30 = vld [vmem:[%s1027_s7] ss:$0 sm:$0xff] }
 0x125   : > { %v410_v33 = vmul.f32 %v704_v29, %v406_v31 }
 0x127   : > { %v918_v34 = vadd.f32 %v705_v32, %v410_v33 }
 0x129   : > { %658 = vmatmul.msk.f32.vlgmr.msra.gmra.mxu0 %vm377_vm0, %v918_v34 }
 0x1a6   : > { %v443_v42 = vpop.f32.mrf.mxu0 }
 0x1a7   : > { %v444_v44 = vadd.f32 %v706_v39, %v443_v42 }
 0x1a9   : > { %v447_v46 = vmul.f32 0.70710677, %v444_v44  ;;  %v446_v27 = vmul.f32 0.5, %v444_v44 }
 0x1ab   : > { %v448_v48 = vmul.f32 %v447_v46, %v447_v46 }
 0x1ad   : > { %v449_v50 = vmin.f32 %v448_v48, 16.0 }
 0x1af   : > { %v450_v52 = vmul.f32 2.1237322e-06, %v449_v50  ;;  %v461_v53 = vmul.f32 3.8918573e-05, %v449_v50 }
 0x1b1   : > { %v451_v55 = vadd.f32 0.00028619796, %v450_v52  ;;  %v462_v56 = vadd.f32 0.001143296, %v461_v53 }
 0x1b3   : > { %v452_v58 = vmul.f32 %v451_v55, %v449_v50  ;;  %v463_v59 = vmul.f32 %v462_v56, %v449_v50 }
 0x1b5   : > { %v464_v61 = vadd.f32 0.014752088, %v463_v59  ;;  %v453_v62 = vadd.f32 0.0036580483, %v452_v58 }
 0x1b7   : > { %v465_v0 = vmul.f32 %v464_v61, %v449_v50  ;;  %v454_v3 = vmul.f32 %v453_v62, %v449_v50 }
 0x1b9   : > { %v466_v2 = vadd.f32 0.112945676, %v465_v0  ;;  %v455_v6 = vadd.f32 0.05243302, %v454_v3 }
 0x1bb   : > { %v467_v4 = vmul.f32 %v466_v2, %v449_v50  ;;  %v456_v9 = vmul.f32 %v455_v6, %v449_v50 }
 0x1bd   : > { %v468_v5 = vadd.f32 0.4994258, %v467_v4  ;;  %v457_v11 = vadd.f32 0.18741608, %v456_v9 }
 0x1bf   : > { %v469_v7 = vmul.f32 %v468_v5, %v449_v50  ;;  %v458_v13 = vmul.f32 %v457_v11, %v449_v50 }
 0x1c1   : > { %v470_v8 = vadd.f32 1.0, %v469_v7  ;;  %v459_v17 = vadd.f32 1.1283791, %v458_v13 }
 0x1c3   : > { %714 = vrcp.f32 %v470_v8  ;;  %v482_v16 = vand.u32 2147483648, %v470_v8  ;;  %v480_v19 = vand.u32 2147483647, %v470_v8  ;;  %vm476_vm6 = vweird.f32 %v470_v8 }
 0x1c4   : > { %v460_v22 = vmul.f32 %v459_v17, %v447_v46 }
 0x1c5   : > { %v483_v21 = vor.u32 1.1754944e-38, %v482_v16  ;;  %vm481_vm8 = vcmp.eq.f32.partialorder %v480_v19, 8.507059e+37 }
 0x1c9   : > { %v715_v12 = vpop.eup %714 }
 0x1ca   : > { %v472_v14 = vmul.f32 %v715_v12, %v470_v8  ;;  %vm477_vm5 = vweird.f32 %v715_v12 }
 0x1cb   : > { %vm478_vm7 = vmor %vm476_vm6, %vm477_vm5 }
 0x1cc   : > { %v473_v15 = vsub.f32 1.0, %v472_v14 }
 0x1ce   : > { %v474_v18 = vmul.f32 %v715_v12, %v473_v15 }
 0x1d0   : > { %v475_v20 = vadd.f32 %v715_v12, %v474_v18 }
 0x1d2   : > { %v479_v23 = vsel %vm478_vm7, %v715_v12, %v475_v20 }
 0x1d3   : > { %v484_v24 = vsel %vm481_vm8, %v483_v21, %v479_v23 }
 0x1d4   : > { %v485_v25 = vmul.f32 %v484_v24, %v460_v22 }
 0x1d6   : > { %v659_v26 = vclamps-f32 %v485_v25, 1.0 }
 0x1d8   : > { %v488_v28 = vadd.f32 1.0, %v659_v26 }
 0x1da   : > { %v489_v29 = vmul.f32 %v488_v28, %v446_v27 }
 0x1dc   : > { %526 = vmatmul.f32.vlgmr.msra.gmra.mxu1 %v489_v29 }
 0x259   : > { %v527_v31 = vpop.f32.mrf.mxu1 }
 0x25a   : > { %v528_v32 = vadd.f32 %v707_v30, %v527_v31 }
 0x25c   : > { %v530_v33 = vadd.f32 %v528_v32, %v918_v34 }
 0x25e   : > { %v533_v35 = vsel %vm377_vm0, %v530_v33, 0.0 }
 0x25f   : > { %534 = vadd.xlane.f32.xlu1 %v533_v35 }
 0x2d2   : > { %v535_v36 = vpop.xlane.xlu1 %534 }
 0x2d3   : > { %v536_v37 = vmul.f32 %v535_v36, %v895_v10 }
 0x2d5   : > { %v537_v38 = vsub.f32 %v530_v33, %v536_v37 }
 0x2d7   : > { %v538_v39 = vmul.f32 %v537_v38, %v537_v38 }
 0x2d9   : > { %v539_v40 = vsel %vm377_vm0, %v538_v39, 0.0 }
 0x2da   : > { %540 = vadd.xlane.f32.xlu1 %v539_v40 }
 0x34d   : > { %v541_v41 = vpop.xlane.xlu1 %540 }
 0x34e   : > { %v542_v42 = vmul.f32 %v541_v41, %v895_v10 }
 0x350   : > { %v543_v43 = vadd.f32 1e-12, %v542_v42 }
 0x352   : > { %716 = vrsqrt.f32 %v543_v43  ;;  %vm550_vm10 = vweird.f32 %v543_v43 }
 0x358   : > { %v717_v44 = vpop.eup %716 }
 0x359   : > { %v545_v34 = vmul.f32 %v717_v44, %v543_v43  ;;  %vm551_vm9 = vweird.f32 %v717_v44 }
 0x35a   : > { %vm552_vm11 = vmor %vm550_vm10, %vm551_vm9 }
 0x35b   : > { %v546_v45 = vmul.f32 %v717_v44, %v545_v34 }
 0x35d   : > { %v547_v46 = vmul.f32 0.5, %v546_v45 }
 0x35f   : > { %v548_v47 = vsub.f32 1.5, %v547_v46 }
 0x361   : > { %v549_v48 = vmul.f32 %v717_v44, %v548_v47 }
 0x363   : > { %v553_v10 = vsel %vm552_vm11, %v717_v44, %v549_v48 }
 0x364   : > { %v554_v50 = vmul.f32 %v553_v10, %v537_v38 }
 0x366   : > { %v558_v52 = vmul.f32 %v708_v49, %v554_v50 }
 0x368   : > { %v562_v53 = vadd.f32 %v709_v51, %v558_v52 }
 0x36a   : > { %563 = vst.msk [vmem:[%s363_s25] sm:$0xff] %vm377_vm0, %v562_v53 }
 0x36b   : > { %745 = shalt.err (!%p742_p3)
}
 0x36c   : > { %664 = dma.vmem_to_hbm [thread:$0]  (%p876_p5), %s578_s17, 128, %s580_s0, %s565_s29  }
 0x36d PF: > { %p670_p4 = scmp.ge.s32.totalorder %s780_s16, 2  ;;  %s591_s26 = sand.u32 1, %s768_s13  }
 0x36e   : > { %s592_s21 = scalar_lea.sflag [#allocation3], %s591_s26 }
 0x36f   : > { %p667_p7 = pnand %p670_p4, %p880_p6 }
 0x371   : > { %p668_p8 = pneg %p667_p7 }
 0x373   : > { %763 = dma.done.wait (%p668_p8), %s592_s21, 128  }
 0x374   : > { %765 = vsyncadd (%p668_p8), %s592_s21, 4294967168  ;;  %p20_p9 = scmp.ge.s32.totalorder %s863_s19, 4   ;;  %s1035_s13 = smov %s772_s14 }
 0x375   : > { %s1036_s14 = smov %s776_s15  ;;  %s1037_s15 = smov %s874_s22 }
 0x376   : > { %s1038_s16 = smov %s863_s19  ;;  %22 = sbr.rel (!%p20_p9) target bundleno = 5 (0x5), region = 98 }
 0x37b   :  { %598 = vsyncpa [#allocation3], 1 }
 0x37c   :  { %600 = vsyncpa [#allocation3 + $0x1], 1 }

// kernel: tpu_custom_call.1
= control target key start
LH: loop header
LB: loop body
LE: loop exit
PB: predicated region body
PF: predicated region fallthrough
CT: control target
= control target key end

     0   :  { %s1020_s0 = inlined_call_operand.vmem [shape: f32[16,32], index: 0, kind: input, shape index: {}]   ;;  %s1021_s1 = inlined_call_operand.vmem [shape: f32[16,32], index: 1, kind: input, shape index: {}]   ;;  %s1022_s2 = inlined_call_operand.vmem [shape: f32[1,32], index: 2, kind: input, shape index: {}]   ;;  %s1023_s3 = inlined_call_operand.vmem [shape: f32[1,32], index: 3, kind: input, shape index: {}]   ;;  %s1024_s4 = inlined_call_operand.vmem [shape: f32[32,128], index: 4, kind: input, shape index: {}]   ;;  %s1025_s5 = inlined_call_operand.vmem [shape: f32[1,128], index: 5, kind: input, shape index: {}]   ;;  %s1026_s6 = inlined_call_operand.vmem [shape: f32[128,32], index: 6, kind: input, shape index: {}]   ;;  %s1027_s7 = inlined_call_operand.vmem [shape: f32[1,32], index: 7, kind: input, shape index: {}]   ;;  %s1028_s8 = inlined_call_operand.vmem [shape: f32[1,32], index: 8, kind: input, shape index: {}]   ;;  %s1029_s9 = inlined_call_operand.vmem [shape: f32[1,32], index: 9, kind: input, shape index: {}]   ;;  %s1030_s10 = inlined_call_operand.hbm [shape: f32[16,32], index: 10, kind: output, shape index: {}]  }
   0x1   :  { %1031 = sst [smem:[#allocation5_spill]] %s1020_s0 }
   0x2   :  { %15 = vsyncpa [#allocation3], 0 }
   0x3   :  { %17 = vsyncpa [#allocation3 + $0x1], 0  ;;  %s838_s13 = smov 0   ;;  %s840_s14 = smov 0  }
   0x4   :  { %s842_s15 = smov 0   ;;  %s844_s16 = smov 0  }
   0x5 LB: > { %s859_s17 = sadd.s32 4294967295, %s780_s16   ;;  %s651_s18 = sadd.s32 4294967294, %s780_s16   ;;  %s780_s16 = sphi %s844_s16, %s1038_s16   ;;  %s776_s15 = sphi %s842_s15, %s1037_s15   ;;  %s772_s14 = sphi %s840_s14, %s1036_s14   ;;  %s768_s13 = sphi %s838_s13, %s1035_s13  }
   0x6   : > { %s863_s19 = sadd.s32 1, %s780_s16   ;;  %s250_s20 = sadd.s32 1, %s776_s15 }
   0x7   : > { %s247_s21 = ssub.s32 %s780_s16, %s863_s19  ;;  %p260_p0 = scmp.ne.s32.totalorder %s776_s15, %s772_s14 }
   0x8   : > { %p248_p1 = scmp.eq.s32.totalorder %s247_s21, 0  ;;  %p261_p2 = scmp.eq.s32.totalorder %s859_s17, 1 }
   0x9   : > { %p266_p3 = scmp.ne.s32.totalorder %s772_s14, %s768_s13  ;;  %p267_p4 = scmp.eq.s32.totalorder %s651_s18, 1 }
   0xa   : > { %s874_s22 = scalar_select %p248_p1, %s776_s15, %s250_s20  }
   0xb   : > { %p876_p5 = por %p261_p2, %p260_p0  ;;  %p880_p6 = por %p267_p4, %p266_p3 }
   0xc   : > { %p654_p7 = scmp.ge.s32.totalorder %s780_s16, 1  ;;  %p323_p8 = scmp.lt.s32.totalorder %s780_s16, 3 }
   0xe   : > { %p324_p9 = pnand %p654_p7, %p323_p8 }
   0xf   : > { %p364_p10 = scmp.lt.s32.totalorder (!%p324_p9), %s859_s17, 1  ;;  %s1034_s0 = sld [smem:[#allocation5_spill]] (!%p324_p9) }
  0x10   : > { %327 = sbr.rel (%p324_p9) target bundleno = 877 (0x36d), region = 60  ;;  %s661_s28 = sshll.u32 (!%p324_p9), %s859_s17, 3 }
  0x11   : > { %s575_s18 = scalar_lea.hbm (!%p324_p9), %s1030_s10, %s661_s28 }
  0x15   : > { %s365_s25 = scalar_select %p364_p10, %s859_s17, 1  ;;  %vm377_vm0 = vcmask 261120   ;;  %v782_v4 = vmov 32.0   ;;  %v418_v16 = vld [vmem:[%s1024_s4 + $0x18] sm:$0xff]  ;;  %v417_v17 = vld [vmem:[%s1024_s4 + $0x10] sm:$0xff]  ;;  %v416_v18 = vld [vmem:[%s1024_s4 + $0x8] sm:$0xff] }
  0x16   : > { %710 = vrcp.f32 %v782_v4  ;;  %438 = vmatpush.msra.mxu0 %v418_v16  ;;  %v415_v19 = vld [vmem:[%s1024_s4] sm:$0xff]  ;;  %v505_v35 = vld [vmem:[%s1026_s6 + $0x78] sm:$0xff]  ;;  %v504_v36 = vld [vmem:[%s1026_s6 + $0x70] sm:$0xff] }
  0x17   : > { %s656_s26 = sshll.u32 %s365_s25, 3  ;;  %v704_v29 = vld [vmem:[%s1022_s2] ss:$0 sm:$0xff]  ;;  %510 = vmatpush.msra.mxu1 %v505_v35  ;;  %v503_v37 = vld [vmem:[%s1026_s6 + $0x68] sm:$0xff]  ;;  %v501_v40 = vld [vmem:[%s1026_s6 + $0x58] sm:$0xff] }
  0x18   : > { %s367_s29 = scalar_lea.vmem %s1034_s0, %s656_s26  ;;  %s371_s12 = scalar_lea.vmem %s1021_s1, %s656_s26  ;;  %439 = vmatpush.msra.mxu0 %v417_v17  ;;  %v705_v32 = vld [vmem:[%s1023_s3] ss:$0 sm:$0xff]  ;;  %v500_v41 = vld [vmem:[%s1026_s6 + $0x50] sm:$0xff]  ;;  %v499_v43 = vld [vmem:[%s1026_s6 + $0x48] sm:$0xff] }
  0x19   : > { %v372_v0 = vld [vmem:[%s371_s12] sm:$0xff]  ;;  %511 = vmatpush.msra.mxu1 %v504_v36  ;;  %v497_v47 = vld [vmem:[%s1026_s6 + $0x38] sm:$0xff]  ;;  %v496_v49 = vld [vmem:[%s1026_s6 + $0x30] sm:$0xff]  ;;  %s361_s26 = sand.u32 1, %s772_s14   ;;  %s579_s0 = sshll.u32 %s575_s18, 4  ;;  %s580_s0 = int_to_ptr.hbm [resolvable:$true] %s579_s0 }
  0x1a   : > { %v373_v1 = vld [vmem:[%s367_s29] sm:$0xff]  ;;  %440 = vmatpush.msra.mxu0 %v416_v18  ;;  %v495_v51 = vld [vmem:[%s1026_s6 + $0x28] sm:$0xff]  ;;  %v493_v57 = vld [vmem:[%s1026_s6 + $0x18] sm:$0xff]  ;;  %s655_s27 = sshll.u32 %s361_s26, 3  ;;  %s565_s29 = scalar_lea.sflag [#allocation3], %s361_s26 }
  0x1b   : > { %v374_v2 = vadd.f32 %v373_v1, %v372_v0  ;;  %512 = vmatpush.msra.mxu1 %v503_v37  ;;  %v502_v38 = vld [vmem:[%s1026_s6 + $0x60] sm:$0xff]  ;;  %v492_v60 = vld [vmem:[%s1026_s6 + $0x10] sm:$0xff]  ;;  %v491_v63 = vld [vmem:[%s1026_s6 + $0x8] sm:$0xff]  ;;  %s363_s25 = scalar_lea.vmem [#allocation2], %s655_s27  ;;  %s732_s30 = sshra.s32 %s580_s0, 4  ;;  %s733_s30 = int_to_ptr.hbm [resolvable:$true] %s732_s30 }
  0x1c   : > { %v711_v5 = vpop.eup %710  ;;  %441 = vmatpush.msra.mxu0 %v415_v19  ;;  %v706_v39 = vld [vmem:[%s1025_s5] ss:$0 sm:$0xff]  ;;  %s577_s17 = sshll.u32 %s363_s25, 4  ;;  %s734_s28 = scalar_lea.hbm %s733_s30, 8  ;;  %s578_s17 = int_to_ptr.vmem [resolvable:$true] %s577_s17 }
  0x1d   : > { %v378_v3 = vsel %vm377_vm0, %v374_v2, 0.0  ;;  %v382_v6 = vmul.f32 32.0, %v711_v5  ;;  %vm386_vm1 = vweird.f32 %v711_v5  ;;  %513 = vmatpush.msra.mxu1 %v502_v38  ;;  %v498_v45 = vld [vmem:[%s1026_s6 + $0x40] sm:$0xff]  ;;  %p735_p11 = scmp.ne.s32.totalorder %s733_s30, %s734_s28  ;;  %s738_s27 = scalar_lea.hbm %s1030_s10, 16 }
  0x1e   : > { %379 = vadd.xlane.f32.xlu0 %v378_v3  ;;  %v494_v54 = vld [vmem:[%s1026_s6 + $0x20] sm:$0xff]  ;;  %p739_p0 = scmp.lt.s32.totalorder %s733_s30, %s1030_s10  ;;  %p740_p1 = scmp.lt.s32.totalorder %s738_s27, %s734_s28 }
  0x1f   : > { %v383_v7 = vsub.f32 1.0, %v382_v6  ;;  %514 = vmatpush.msra.mxu1 %v501_v40  ;;  %v490_v1 = vld [vmem:[%s1026_s6] sm:$0xff]  ;;  %p736_p12 = pnand %p735_p11, %p876_p5 }
  0x20   : > { %p741_p2 = por %p740_p1, %p739_p0 }
  0x21   : > { %v384_v8 = vmul.f32 %v711_v5, %v383_v7  ;;  %515 = vmatpush.msra.mxu1 %v500_v41  ;;  %p737_p13 = pneg %p736_p12 }
  0x23   : > { %v385_v9 = vadd.f32 %v711_v5, %v384_v8  ;;  %516 = vmatpush.msra.mxu1 %v499_v43  ;;  %p742_p3 = pnand %p741_p2, %p737_p13 }
  0x25   : > { %v895_v10 = vsel %vm386_vm1, %v711_v5, %v385_v9  ;;  %517 = vmatpush.msra.mxu1 %v498_v45 }
  0x27   : > { %518 = vmatpush.msra.mxu1 %v497_v47 }
  0x29   : > { %519 = vmatpush.msra.mxu1 %v496_v49  ;;  %v708_v49 = vld [vmem:[%s1028_s8] ss:$0 sm:$0xff] }
  0x2b   : > { %520 = vmatpush.msra.mxu1 %v495_v51  ;;  %v709_v51 = vld [vmem:[%s1029_s9] ss:$0 sm:$0xff] }
  0x2d   : > { %521 = vmatpush.msra.mxu1 %v494_v54 }
  0x2f   : > { %522 = vmatpush.msra.mxu1 %v493_v57 }
  0x31   : > { %523 = vmatpush.msra.mxu1 %v492_v60 }
  0x33   : > { %524 = vmatpush.msra.mxu1 %v491_v63 }
  0x35   : > { %525 = vmatpush.msra.mxu1 %v490_v1 }
  0x91   : > { %v380_v11 = vpop.xlane.xlu0 %379 }
  0x92   : > { %v388_v12 = vmul.f32 %v895_v10, %v380_v11 }
  0x94   : > { %v389_v13 = vsub.f32 %v374_v2, %v388_v12 }
  0x96   : > { %v390_v14 = vmul.f32 %v389_v13, %v389_v13 }
  0x98   : > { %v391_v15 = vsel %vm377_vm0, %v390_v14, 0.0 }
  0x99   : > { %392 = vadd.xlane.f32.xlu0 %v391_v15 }
 0x10c   : > { %v393_v20 = vpop.xlane.xlu0 %392 }
 0x10d   : > { %v394_v21 = vmul.f32 %v393_v20, %v895_v10 }
 0x10f   : > { %v395_v22 = vadd.f32 1e-12, %v394_v21 }
 0x111   : > { %712 = vrsqrt.f32 %v395_v22  ;;  %vm402_vm3 = vweird.f32 %v395_v22 }
 0x117   : > { %v713_v23 = vpop.eup %712 }
 0x118   : > { %v397_v24 = vmul.f32 %v713_v23, %v395_v22  ;;  %vm403_vm2 = vweird.f32 %v713_v23 }
 0x119   : > { %vm404_vm4 = vmor %vm402_vm3, %vm403_vm2 }
 0x11a   : > { %v398_v25 = vmul.f32 %v713_v23, %v397_v24 }
 0x11c   : > { %v399_v26 = vmul.f32 0.5, %v398_v25 }
 0x11e   : > { %v400_v27 = vsub.f32 1.5, %v399_v26 }
 0x120   : > { %v401_v28 = vmul.f32 %v713_v23, %v400_v27 }
 0x122   : > { %v405_v30 = vsel %vm404_vm4, %v713_v23, %v401_v28 }
 0x123   : > { %v406_v31 = vmul.f32 %v405_v30, %v389_v13  ;;  %v707_v30 = vld [vmem:[%s1027_s7] ss:$0 sm:$0xff] }
 0x125   : > { %v410_v33 = vmul.f32 %v704_v29, %v406_v31 }
 0x127   : > { %v918_v34 = vadd.f32 %v705_v32, %v410_v33 }
 0x129   : > { %658 = vmatmul.msk.f32.vlgmr.msra.gmra.mxu0 %vm377_vm0, %v918_v34 }
 0x1a6   : > { %v443_v42 = vpop.f32.mrf.mxu0 }
 0x1a7   : > { %v444_v44 = vadd.f32 %v706_v39, %v443_v42 }
 0x1a9   : > { %v447_v46 = vmul.f32 0.70710677, %v444_v44  ;;  %v446_v27 = vmul.f32 0.5, %v444_v44 }
 0x1ab   : > { %v448_v48 = vmul.f32 %v447_v46, %v447_v46 }
 0x1ad   : > { %v449_v50 = vmin.f32 %v448_v48, 16.0 }
 0x1af   : > { %v450_v52 = vmul.f32 2.1237322e-06, %v449_v50  ;;  %v461_v53 = vmul.f32 3.8918573e-05, %v449_v50 }
 0x1b1   : > { %v451_v55 = vadd.f32 0.00028619796, %v450_v52  ;;  %v462_v56 = vadd.f32 0.001143296, %v461_v53 }
 0x1b3   : > { %v452_v58 = vmul.f32 %v451_v55, %v449_v50  ;;  %v463_v59 = vmul.f32 %v462_v56, %v449_v50 }
 0x1b5   : > { %v464_v61 = vadd.f32 0.014752088, %v463_v59  ;;  %v453_v62 = vadd.f32 0.0036580483, %v452_v58 }
 0x1b7   : > { %v465_v0 = vmul.f32 %v464_v61, %v449_v50  ;;  %v454_v3 = vmul.f32 %v453_v62, %v449_v50 }
 0x1b9   : > { %v466_v2 = vadd.f32 0.112945676, %v465_v0  ;;  %v455_v6 = vadd.f32 0.05243302, %v454_v3 }
 0x1bb   : > { %v467_v4 = vmul.f32 %v466_v2, %v449_v50  ;;  %v456_v9 = vmul.f32 %v455_v6, %v449_v50 }
 0x1bd   : > { %v468_v5 = vadd.f32 0.4994258, %v467_v4  ;;  %v457_v11 = vadd.f32 0.18741608, %v456_v9 }
 0x1bf   : > { %v469_v7 = vmul.f32 %v468_v5, %v449_v50  ;;  %v458_v13 = vmul.f32 %v457_v11, %v449_v50 }
 0x1c1   : > { %v470_v8 = vadd.f32 1.0, %v469_v7  ;;  %v459_v17 = vadd.f32 1.1283791, %v458_v13 }
 0x1c3   : > { %714 = vrcp.f32 %v470_v8  ;;  %v482_v16 = vand.u32 2147483648, %v470_v8  ;;  %v480_v19 = vand.u32 2147483647, %v470_v8  ;;  %vm476_vm6 = vweird.f32 %v470_v8 }
 0x1c4   : > { %v460_v22 = vmul.f32 %v459_v17, %v447_v46 }
 0x1c5   : > { %v483_v21 = vor.u32 1.1754944e-38, %v482_v16  ;;  %vm481_vm8 = vcmp.eq.f32.partialorder %v480_v19, 8.507059e+37 }
 0x1c9   : > { %v715_v12 = vpop.eup %714 }
 0x1ca   : > { %v472_v14 = vmul.f32 %v715_v12, %v470_v8  ;;  %vm477_vm5 = vweird.f32 %v715_v12 }
 0x1cb   : > { %vm478_vm7 = vmor %vm476_vm6, %vm477_vm5 }
 0x1cc   : > { %v473_v15 = vsub.f32 1.0, %v472_v14 }
 0x1ce   : > { %v474_v18 = vmul.f32 %v715_v12, %v473_v15 }
 0x1d0   : > { %v475_v20 = vadd.f32 %v715_v12, %v474_v18 }
 0x1d2   : > { %v479_v23 = vsel %vm478_vm7, %v715_v12, %v475_v20 }
 0x1d3   : > { %v484_v24 = vsel %vm481_vm8, %v483_v21, %v479_v23 }
 0x1d4   : > { %v485_v25 = vmul.f32 %v484_v24, %v460_v22 }
 0x1d6   : > { %v659_v26 = vclamps-f32 %v485_v25, 1.0 }
 0x1d8   : > { %v488_v28 = vadd.f32 1.0, %v659_v26 }
 0x1da   : > { %v489_v29 = vmul.f32 %v488_v28, %v446_v27 }
 0x1dc   : > { %526 = vmatmul.f32.vlgmr.msra.gmra.mxu1 %v489_v29 }
 0x259   : > { %v527_v31 = vpop.f32.mrf.mxu1 }
 0x25a   : > { %v528_v32 = vadd.f32 %v707_v30, %v527_v31 }
 0x25c   : > { %v530_v33 = vadd.f32 %v528_v32, %v918_v34 }
 0x25e   : > { %v533_v35 = vsel %vm377_vm0, %v530_v33, 0.0 }
 0x25f   : > { %534 = vadd.xlane.f32.xlu1 %v533_v35 }
 0x2d2   : > { %v535_v36 = vpop.xlane.xlu1 %534 }
 0x2d3   : > { %v536_v37 = vmul.f32 %v535_v36, %v895_v10 }
 0x2d5   : > { %v537_v38 = vsub.f32 %v530_v33, %v536_v37 }
 0x2d7   : > { %v538_v39 = vmul.f32 %v537_v38, %v537_v38 }
 0x2d9   : > { %v539_v40 = vsel %vm377_vm0, %v538_v39, 0.0 }
 0x2da   : > { %540 = vadd.xlane.f32.xlu1 %v539_v40 }
 0x34d   : > { %v541_v41 = vpop.xlane.xlu1 %540 }
 0x34e   : > { %v542_v42 = vmul.f32 %v541_v41, %v895_v10 }
 0x350   : > { %v543_v43 = vadd.f32 1e-12, %v542_v42 }
 0x352   : > { %716 = vrsqrt.f32 %v543_v43  ;;  %vm550_vm10 = vweird.f32 %v543_v43 }
 0x358   : > { %v717_v44 = vpop.eup %716 }
 0x359   : > { %v545_v34 = vmul.f32 %v717_v44, %v543_v43  ;;  %vm551_vm9 = vweird.f32 %v717_v44 }
 0x35a   : > { %vm552_vm11 = vmor %vm550_vm10, %vm551_vm9 }
 0x35b   : > { %v546_v45 = vmul.f32 %v717_v44, %v545_v34 }
 0x35d   : > { %v547_v46 = vmul.f32 0.5, %v546_v45 }
 0x35f   : > { %v548_v47 = vsub.f32 1.5, %v547_v46 }
 0x361   : > { %v549_v48 = vmul.f32 %v717_v44, %v548_v47 }
 0x363   : > { %v553_v10 = vsel %vm552_vm11, %v717_v44, %v549_v48 }
 0x364   : > { %v554_v50 = vmul.f32 %v553_v10, %v537_v38 }
 0x366   : > { %v558_v52 = vmul.f32 %v708_v49, %v554_v50 }
 0x368   : > { %v562_v53 = vadd.f32 %v709_v51, %v558_v52 }
 0x36a   : > { %563 = vst.msk [vmem:[%s363_s25] sm:$0xff] %vm377_vm0, %v562_v53 }
 0x36b   : > { %745 = shalt.err (!%p742_p3)
}
 0x36c   : > { %664 = dma.vmem_to_hbm [thread:$0]  (%p876_p5), %s578_s17, 128, %s580_s0, %s565_s29  }
 0x36d PF: > { %p670_p4 = scmp.ge.s32.totalorder %s780_s16, 2  ;;  %s591_s26 = sand.u32 1, %s768_s13  }
 0x36e   : > { %s592_s21 = scalar_lea.sflag [#allocation3], %s591_s26 }
 0x36f   : > { %p667_p7 = pnand %p670_p4, %p880_p6 }
 0x371   : > { %p668_p8 = pneg %p667_p7 }
 0x373   : > { %763 = dma.done.wait (%p668_p8), %s592_s21, 128  }
 0x374   : > { %765 = vsyncadd (%p668_p8), %s592_s21, 4294967168  ;;  %p20_p9 = scmp.ge.s32.totalorder %s863_s19, 4   ;;  %s1035_s13 = smov %s772_s14 }
 0x375   : > { %s1036_s14 = smov %s776_s15  ;;  %s1037_s15 = smov %s874_s22 }
 0x376   : > { %s1038_s16 = smov %s863_s19  ;;  %22 = sbr.rel (!%p20_p9) target bundleno = 5 (0x5), region = 98 }
 0x37b   :  { %598 = vsyncpa [#allocation3], 1 }
 0x37c   :  { %600 = vsyncpa [#allocation3 + $0x1], 1 }

</bundles_post_ra>
